<compile_context>
chip_gen: v5e
topology: v5e:2x2
jax: 0.10.0
libtpu: 0.0.40
codegen_flags: <defaults>
</compile_context>

<pallas_src>
import jax
import jax.numpy as jnp
from jax.experimental import pallas as pl
from jax.experimental.pallas import tpu as pltpu

# Layer dims implied by the PyTorch module:
#   round(115*0.25)=29, round(115*0.33)=38, round(115*0.5)=58, round(115*0.75)=86, 115
D_IN, D1, D2, D3, D_OUT = 29, 38, 58, 86, 115
D_OUT_PAD = 128          # lane-dense padded output width (per sample)

MAX_TILE_ROWS = 2048     # rows per grid step (well inside v7x's 64 MiB VMEM)
TARGET_STEPS = 4         # aim for >=4 grid steps (megacore + pipeline depth)
SUB_B = 256              # in-kernel sub-block rows (activations stay in vregs)


def _cdiv(a, b):
    return -(-a // b)


def _round_up(x, m):
    return _cdiv(x, m) * m


# --------------------------------------------------------------------------
# Kernel
# --------------------------------------------------------------------------

def _decoder_kernel(z_ref,
                    w1_ref, b1_ref,
                    w2_ref, b2_ref,
                    w3_ref, b3_ref,
                    w4_ref, b4_ref,
                    out_ref):
    """Fused 4-layer MLP on one (tile_b, K) batch tile.

    Shape-generic: works for the plain layout (K=29, out=128) and the 2-row
    packed layout (K=58, out=256).  The batch tile is processed in SUB_B-row
    sub-blocks so inter-layer activations stay in vregs rather than being
    round-tripped through VMEM between layers.
    """

    def mlp(z):
        h = jnp.maximum(
            jnp.dot(z, w1_ref[...], preferred_element_type=jnp.float32)
            + b1_ref[...], 0.0)
        h = jnp.maximum(
            jnp.dot(h, w2_ref[...], preferred_element_type=jnp.float32)
            + b2_ref[...], 0.0)
        h = jnp.maximum(
            jnp.dot(h, w3_ref[...], preferred_element_type=jnp.float32)
            + b3_ref[...], 0.0)
        return (jnp.dot(h, w4_ref[...], preferred_element_type=jnp.float32)
                + b4_ref[...])

    tile_b = z_ref.shape[0]                 # static Python int
    n_full, rem = divmod(tile_b, SUB_B)
    for s in range(n_full):                 # static, fully unrolled
        r = s * SUB_B
        out_ref[pl.ds(r, SUB_B), :] = mlp(
            z_ref[pl.ds(r, SUB_B), :]).astype(out_ref.dtype)
    if rem:
        r = n_full * SUB_B
        out_ref[pl.ds(r, rem), :] = mlp(
            z_ref[pl.ds(r, rem), :]).astype(out_ref.dtype)


# --------------------------------------------------------------------------
# One-time parameter preparation (padding / block-diagonal packing)
# --------------------------------------------------------------------------

def _use_row_packing():
    """2-row packing only pays off on 256-wide MXU parts (v6e / v7x)."""
    try:
        kind = jax.devices()[0].device_kind.lower()
    except Exception:
        return True
    return not any(t in kind for t in ("v2", "v3", "v4", "v5"))


def prepare_params(params, pack2=None):
    """Pack / pad the (in,out)-layout params for the kernel.  Run ONCE."""
    if pack2 is None:
        pack2 = _use_row_packing()
    (w1, b1), (w2, b2), (w3, b3), (w4, b4) = params

    if not pack2:
        # Plain layout: only the last layer is zero-padded 115 -> 128 so the
        # store is full-lane (no vst.msk).  Zeros -> no value leakage.
        w4p = jnp.zeros((D3, D_OUT_PAD), w4.dtype).at[:, :D_OUT].set(w4)
        b4p = jnp.zeros((1, D_OUT_PAD), b4.dtype).at[:, :D_OUT].set(b4)
        return (w1, b1, w2, b2, w3, b3, w4p, b4p)

    # Packed layout: two batch rows per kernel row, block-diagonal weights.
    def blockdiag(w):
        din, dout = w.shape
        out = jnp.zeros((2 * din, 2 * dout), w.dtype)
        out = out.at[:din, :dout].set(w)
        out = out.at[din:, dout:].set(w)
        return out

    w1p, w2p, w3p = blockdiag(w1), blockdiag(w2), blockdiag(w3)
    b1p = jnp.concatenate([b1, b1], axis=1)
    b2p = jnp.concatenate([b2, b2], axis=1)
    b3p = jnp.concatenate([b3, b3], axis=1)
    # Last layer: each packed sample lands in its own lane-dense 128-wide half
    # so the output unpack (R,256)->(2R,128) is a free contiguous reshape.
    w4p = jnp.zeros((2 * D3, 2 * D_OUT_PAD), w4.dtype)
    w4p = w4p.at[:D3, :D_OUT].set(w4)
    w4p = w4p.at[D3:, D_OUT_PAD:D_OUT_PAD + D_OUT].set(w4)
    b4p = jnp.zeros((1, 2 * D_OUT_PAD), b4.dtype)
    b4p = b4p.at[:, :D_OUT].set(b4)
    b4p = b4p.at[:, D_OUT_PAD:D_OUT_PAD + D_OUT].set(b4)
    return (w1p, b1p, w2p, b2p, w3p, b3p, w4p, b4p)


def _is_packed(kparams):
    return kparams[0].shape[0] == 2 * D_IN


# --------------------------------------------------------------------------
# Wrapper
# --------------------------------------------------------------------------

def _choose_tile(rows):
    """Batch tile: >=TARGET_STEPS grid steps when possible, <=MAX_TILE_ROWS,
    multiple of 8, and sized so batch-padding waste stays small."""
    rows8 = _round_up(max(rows, 1), 8)
    steps = max(TARGET_STEPS, _cdiv(rows8, MAX_TILE_ROWS))
    steps = max(1, min(steps, rows8 // 8))   # never pad tiny batches for steps
    return min(_round_up(_cdiv(rows8, steps), 8), MAX_TILE_ROWS)


def variational_decoder_padded(z, kparams):
    """Hot-path entry point.

    Returns a lane-dense (rows_pad, 128) float32 slab; rows [:z.shape[0]] and
    columns [:115] hold linear4(relu(linear3(relu(linear2(relu(linear1(z))))))).
    No unpad copy is materialized here — the consumer's slice fuses.
    """
    B = z.shape[0]
    packed = _is_packed(kparams)

    if packed:
        b2 = _round_up(B, 2)
        if b2 != B:
            z = jnp.pad(z, ((0, b2 - B), (0, 0)))
        zk = z.reshape(b2 // 2, 2 * D_IN)        # free contiguous reshape
    else:
        zk = z
    rows = zk.shape[0]

    tile = _choose_tile(rows)
    rows_pad = _round_up(rows, tile)
    if rows_pad != rows:
        zk = jnp.pad(zk, ((0, rows_pad - rows), (0, 0)))

    k_in = zk.shape[1]                            # 29 or 58
    n_out = kparams[6].shape[1]                   # 128 (plain) or 256 (packed)
    grid = (rows_pad // tile,)

    def const_spec(a):
        # Full-array block, constant index_map -> VMEM-resident across steps.
        return pl.BlockSpec(a.shape, lambda i: (0, 0))

    out = pl.pallas_call(
        _decoder_kernel,
        out_shape=jax.ShapeDtypeStruct((rows_pad, n_out), jnp.float32),
        grid=grid,
        in_specs=[pl.BlockSpec((tile, k_in), lambda i: (i, 0))]
        + [const_spec(a) for a in kparams],
        out_specs=pl.BlockSpec((tile, n_out), lambda i: (i, 0)),
        compiler_params=pltpu.CompilerParams(
            dimension_semantics=("parallel",),
            vmem_limit_bytes=32 * 1024 * 1024,
        ),
    )(zk, *kparams)

    if packed:
        # (rows_pad, 256) -> (2*rows_pad, 128): contiguous split of the two
        # per-row samples back into consecutive batch rows.
        out = out.reshape(rows_pad * 2, D_OUT_PAD)
    return out


def variational_decoder(z, kparams):
    """Convenience wrapper returning exactly (B, 115)."""
    return variational_decoder_padded(z, kparams)[:z.shape[0], :D_OUT]


# --------------------------------------------------------------------------
# Init + reference (pure JAX)
# --------------------------------------------------------------------------

def init_params(key):
    """Deterministic init mimicking nn.Linear's U(-1/sqrt(fan_in), 1/sqrt(fan_in)).
    Weights stored as (in, out) = transpose of PyTorch's (out, in)."""
    dims = [(D_IN, D1), (D1, D2), (D2, D3), (D3, D_OUT)]
    params = []
    for (din, dout) in dims:
        key, kw, kb = jax.random.split(key, 3)
        bound = 1.0 / jnp.sqrt(jnp.float32(din))
        w = jax.random.uniform(kw, (din, dout), jnp.float32, -bound, bound)
        b = jax.random.uniform(kb, (1, dout), jnp.float32, -bound, bound)
        params.append((w, b))
    return params


def reference(z, params):
    h = z
    for i, (w, b) in enumerate(params):
        h = h @ w + b
        if i < len(params) - 1:
            h = jnp.maximum(h, 0.0)
    return h


if __name__ == "__main__":
    key = jax.random.PRNGKey(0)
    key, kz = jax.random.split(key)
    params = init_params(key)

    # Small odd batch (exercises row padding) + a multi-grid-step batch
    # (exercises the in-kernel sub-block loop and the 4-step grid).
    for B in (13, 2500):
        z = jax.random.normal(jax.random.fold_in(kz, B), (B, D_IN), jnp.float32)
        ref = reference(z, params)
        for pack2 in (True, False):          # packed (v6e/v7x) + plain layout
            kp = prepare_params(params, pack2=pack2)
            out_pad = jax.block_until_ready(variational_decoder_padded(z, kp))
            out = out_pad[:B, :D_OUT]        # consumer-side slice (test only)
            assert out.shape == (B, D_OUT), out.shape
            assert jnp.allclose(out, ref, atol=1e-4, rtol=1e-4), (
                f"mismatch vs JAX reference (B={B}, pack2={pack2})")

    print("KERNEL_OK")
</pallas_src>

<mosaic_0001>
module attributes {stable_mosaic.version = 11 : i64} {
  func.func @_decoder_kernel(%arg0: i32, %arg1: memref<8x58xf32, #tpu.memory_space<vmem>>, %arg2: memref<58x76xf32, #tpu.memory_space<vmem>>, %arg3: memref<1x76xf32, #tpu.memory_space<vmem>>, %arg4: memref<76x116xf32, #tpu.memory_space<vmem>>, %arg5: memref<1x116xf32, #tpu.memory_space<vmem>>, %arg6: memref<116x172xf32, #tpu.memory_space<vmem>>, %arg7: memref<1x172xf32, #tpu.memory_space<vmem>>, %arg8: memref<172x256xf32, #tpu.memory_space<vmem>>, %arg9: memref<1x256xf32, #tpu.memory_space<vmem>>, %arg10: memref<8x256xf32, #tpu.memory_space<vmem>>) attributes {dimension_semantics = [#tpu.dimension_semantics<parallel>], iteration_bounds = array<i64: 1>, scalar_prefetch = 0 : i64, scratch_operands = 0 : i64, tpu.core_type = #tpu.core_type<tc>, window_params = [{transform_indices = @transform_0, window_bounds = array<i64: 8, 58>}, {pipeline_mode = #tpu.pipeline_mode<synchronous>, transform_indices = @transform_1, window_bounds = array<i64: 58, 76>}, {pipeline_mode = #tpu.pipeline_mode<synchronous>, transform_indices = @transform_2, window_bounds = array<i64: 1, 76>}, {pipeline_mode = #tpu.pipeline_mode<synchronous>, transform_indices = @transform_3, window_bounds = array<i64: 76, 116>}, {pipeline_mode = #tpu.pipeline_mode<synchronous>, transform_indices = @transform_4, window_bounds = array<i64: 1, 116>}, {pipeline_mode = #tpu.pipeline_mode<synchronous>, transform_indices = @transform_5, window_bounds = array<i64: 116, 172>}, {pipeline_mode = #tpu.pipeline_mode<synchronous>, transform_indices = @transform_6, window_bounds = array<i64: 1, 172>}, {pipeline_mode = #tpu.pipeline_mode<synchronous>, transform_indices = @transform_7, window_bounds = array<i64: 172, 256>}, {pipeline_mode = #tpu.pipeline_mode<synchronous>, transform_indices = @transform_8, window_bounds = array<i64: 1, 256>}, {transform_indices = @transform_9, window_bounds = array<i64: 8, 256>}]} {
    %c0 = arith.constant 0 : index
    %c0_0 = arith.constant 0 : index
    %0 = vector.load %arg1[%c0, %c0_0] : memref<8x58xf32, #tpu.memory_space<vmem>>, vector<8x58xf32>
    %c0_1 = arith.constant 0 : index
    %c0_2 = arith.constant 0 : index
    %1 = vector.load %arg2[%c0_1, %c0_2] : memref<58x76xf32, #tpu.memory_space<vmem>>, vector<58x76xf32>
    %cst = arith.constant dense<0.000000e+00> : vector<8x76xf32>
    %2 = tpu.matmul %0, %1, %cst {dimension_numbers = #tpu.dot_dimension_numbers<[1], [0], [0], [1], [0, 0, 1, 1], [], []>} : vector<8x58xf32>, vector<58x76xf32>, vector<8x76xf32> -> vector<8x76xf32>
    %c0_3 = arith.constant 0 : index
    %c0_4 = arith.constant 0 : index
    %3 = vector.load %arg3[%c0_3, %c0_4] : memref<1x76xf32, #tpu.memory_space<vmem>>, vector<1x76xf32>
    %4 = vector.broadcast %3 : vector<1x76xf32> to vector<8x76xf32>
    %5 = arith.addf %2, %4 : vector<8x76xf32>
    %cst_5 = arith.constant 0.000000e+00 : f32
    %6 = vector.broadcast %cst_5 : f32 to vector<8x76xf32>
    %7 = arith.maximumf %5, %6 : vector<8x76xf32>
    %c0_6 = arith.constant 0 : index
    %c0_7 = arith.constant 0 : index
    %8 = vector.load %arg4[%c0_6, %c0_7] : memref<76x116xf32, #tpu.memory_space<vmem>>, vector<76x116xf32>
    %cst_8 = arith.constant dense<0.000000e+00> : vector<8x116xf32>
    %9 = tpu.matmul %7, %8, %cst_8 {dimension_numbers = #tpu.dot_dimension_numbers<[1], [0], [0], [1], [0, 0, 1, 1], [], []>} : vector<8x76xf32>, vector<76x116xf32>, vector<8x116xf32> -> vector<8x116xf32>
    %c0_9 = arith.constant 0 : index
    %c0_10 = arith.constant 0 : index
    %10 = vector.load %arg5[%c0_9, %c0_10] : memref<1x116xf32, #tpu.memory_space<vmem>>, vector<1x116xf32>
    %11 = vector.broadcast %10 : vector<1x116xf32> to vector<8x116xf32>
    %12 = arith.addf %9, %11 : vector<8x116xf32>
    %cst_11 = arith.constant 0.000000e+00 : f32
    %13 = vector.broadcast %cst_11 : f32 to vector<8x116xf32>
    %14 = arith.maximumf %12, %13 : vector<8x116xf32>
    %c0_12 = arith.constant 0 : index
    %c0_13 = arith.constant 0 : index
    %15 = vector.load %arg6[%c0_12, %c0_13] : memref<116x172xf32, #tpu.memory_space<vmem>>, vector<116x172xf32>
    %cst_14 = arith.constant dense<0.000000e+00> : vector<8x172xf32>
    %16 = tpu.matmul %14, %15, %cst_14 {dimension_numbers = #tpu.dot_dimension_numbers<[1], [0], [0], [1], [0, 0, 1, 1], [], []>} : vector<8x116xf32>, vector<116x172xf32>, vector<8x172xf32> -> vector<8x172xf32>
    %c0_15 = arith.constant 0 : index
    %c0_16 = arith.constant 0 : index
    %17 = vector.load %arg7[%c0_15, %c0_16] : memref<1x172xf32, #tpu.memory_space<vmem>>, vector<1x172xf32>
    %18 = vector.broadcast %17 : vector<1x172xf32> to vector<8x172xf32>
    %19 = arith.addf %16, %18 : vector<8x172xf32>
    %cst_17 = arith.constant 0.000000e+00 : f32
    %20 = vector.broadcast %cst_17 : f32 to vector<8x172xf32>
    %21 = arith.maximumf %19, %20 : vector<8x172xf32>
    %c0_18 = arith.constant 0 : index
    %c0_19 = arith.constant 0 : index
    %22 = vector.load %arg8[%c0_18, %c0_19] : memref<172x256xf32, #tpu.memory_space<vmem>>, vector<172x256xf32>
    %cst_20 = arith.constant dense<0.000000e+00> : vector<8x256xf32>
    %23 = tpu.matmul %21, %22, %cst_20 {dimension_numbers = #tpu.dot_dimension_numbers<[1], [0], [0], [1], [0, 0, 1, 1], [], []>} : vector<8x172xf32>, vector<172x256xf32>, vector<8x256xf32> -> vector<8x256xf32>
    %c0_21 = arith.constant 0 : index
    %c0_22 = arith.constant 0 : index
    %24 = vector.load %arg9[%c0_21, %c0_22] : memref<1x256xf32, #tpu.memory_space<vmem>>, vector<1x256xf32>
    %25 = vector.broadcast %24 : vector<1x256xf32> to vector<8x256xf32>
    %26 = arith.addf %23, %25 : vector<8x256xf32>
    %c0_23 = arith.constant 0 : index
    %c0_24 = arith.constant 0 : index
    %27 = vector.load %arg10[%c0_23, %c0_24] : memref<8x256xf32, #tpu.memory_space<vmem>>, vector<8x256xf32>
    tpu.vector_store %arg10[%c0_23, %c0_24], %26 {strides = array<i32>} : memref<8x256xf32, #tpu.memory_space<vmem>>, vector<8x256xf32>,
    return
  }
  func.func @transform_0(%arg0: i32) -> (i32, i32) {
    %c0_i32 = arith.constant 0 : i32
    %c0_i32_0 = arith.constant 0 : i32
    return %arg0, %c0_i32 : i32, i32
  }
  func.func @transform_1(%arg0: i32) -> (i32, i32) {
    %c0_i32 = arith.constant 0 : i32
    %c0_i32_0 = arith.constant 0 : i32
    %c0_i32_1 = arith.constant 0 : i32
    return %c0_i32, %c0_i32_0 : i32, i32
  }
  func.func @transform_2(%arg0: i32) -> (i32, i32) {
    %c0_i32 = arith.constant 0 : i32
    %c0_i32_0 = arith.constant 0 : i32
    %c0_i32_1 = arith.constant 0 : i32
    return %c0_i32, %c0_i32_0 : i32, i32
  }
  func.func @transform_3(%arg0: i32) -> (i32, i32) {
    %c0_i32 = arith.constant 0 : i32
    %c0_i32_0 = arith.constant 0 : i32
    %c0_i32_1 = arith.constant 0 : i32
    return %c0_i32, %c0_i32_0 : i32, i32
  }
  func.func @transform_4(%arg0: i32) -> (i32, i32) {
    %c0_i32 = arith.constant 0 : i32
    %c0_i32_0 = arith.constant 0 : i32
    %c0_i32_1 = arith.constant 0 : i32
    return %c0_i32, %c0_i32_0 : i32, i32
  }
  func.func @transform_5(%arg0: i32) -> (i32, i32) {
    %c0_i32 = arith.constant 0 : i32
    %c0_i32_0 = arith.constant 0 : i32
    %c0_i32_1 = arith.constant 0 : i32
    return %c0_i32, %c0_i32_0 : i32, i32
  }
  func.func @transform_6(%arg0: i32) -> (i32, i32) {
    %c0_i32 = arith.constant 0 : i32
    %c0_i32_0 = arith.constant 0 : i32
    %c0_i32_1 = arith.constant 0 : i32
    return %c0_i32, %c0_i32_0 : i32, i32
  }
  func.func @transform_7(%arg0: i32) -> (i32, i32) {
    %c0_i32 = arith.constant 0 : i32
    %c0_i32_0 = arith.constant 0 : i32
    %c0_i32_1 = arith.constant 0 : i32
    return %c0_i32, %c0_i32_0 : i32, i32
  }
  func.func @transform_8(%arg0: i32) -> (i32, i32) {
    %c0_i32 = arith.constant 0 : i32
    %c0_i32_0 = arith.constant 0 : i32
    %c0_i32_1 = arith.constant 0 : i32
    return %c0_i32, %c0_i32_0 : i32, i32
  }
  func.func @transform_9(%arg0: i32) -> (i32, i32) {
    %c0_i32 = arith.constant 0 : i32
    %c0_i32_0 = arith.constant 0 : i32
    return %arg0, %c0_i32 : i32, i32
  }
}

</mosaic_0001>

<bundles_post_ra>
// kernel: tpu_custom_call.1
= control target key start
LH: loop header
LB: loop body
LE: loop exit
PB: predicated region body
PF: predicated region fallthrough
CT: control target
= control target key end

     0   :  { %14 = vsyncpa [#allocation3], 0  ;;  %s820_s0 = inlined_call_operand.hbm [shape: f32[8,58], index: 0, kind: input, shape index: {}]   ;;  %s821_s1 = inlined_call_operand.vmem [shape: f32[58,76], index: 1, kind: input, shape index: {}]   ;;  %s822_s2 = inlined_call_operand.vmem [shape: f32[1,76], index: 2, kind: input, shape index: {}]   ;;  %s823_s3 = inlined_call_operand.hbm [shape: f32[76,116], index: 3, kind: input, shape index: {}]   ;;  %s824_s4 = inlined_call_operand.vmem [shape: f32[1,116], index: 4, kind: input, shape index: {}]   ;;  %s825_s5 = inlined_call_operand.vmem [shape: f32[116,172], index: 5, kind: input, shape index: {}]   ;;  %s826_s6 = inlined_call_operand.vmem [shape: f32[1,172], index: 6, kind: input, shape index: {}]   ;;  %s827_s7 = inlined_call_operand.vmem [shape: f32[172,256], index: 7, kind: input, shape index: {}]   ;;  %s828_s8 = inlined_call_operand.vmem [shape: f32[1,256], index: 8, kind: input, shape index: {}]   ;;  %s829_s9 = inlined_call_operand.hbm [shape: f32[8,256], index: 9, kind: output, shape index: {}]  }
   0x1   :  { %15 = vsyncpa [#allocation6], 0 }
   0x2   :  { %16 = vsyncpa [#allocation4], 0  ;;  %s22_s11 = sshll.u32 %s820_s0, 4  ;;  %s493_s12 = smov [#allocation2]   ;;  %s23_s11 = int_to_ptr.hbm [resolvable:$true] %s22_s11 }
   0x3   :  { %s24_s13 = sshll.u32 %s493_s12, 4  ;;  %s36_s16 = sshll.u32 %s823_s3, 4  ;;  %s25_s13 = int_to_ptr.vmem [resolvable:$true] %s24_s13  ;;  %s37_s16 = int_to_ptr.hbm [resolvable:$true] %s36_s16 }
   0x4   :  { %27 = dma.hbm_to_vmem [thread:$0]  %s23_s11, 128, %s25_s13, [#allocation3]  }
   0x5   :  { %s494_s17 = smov [#allocation5]   ;;  %s495_s19 = smov 128  }
   0x6   :  { %s38_s18 = sshll.u32 %s494_s17, 4  ;;  %s496_s20 = smov 8   ;;  %s39_s18 = int_to_ptr.vmem [resolvable:$true] %s38_s18 }
   0x7   :  { %44 = dma.hbm_to_vmem [thread:$0]  %s37_s16, 1280, %s39_s18, [#allocation6], %s495_s19, %s495_s19, %s496_s20  }
   0x8   :  { %487 = dma.done.wait [#allocation3], 128  }
   0x9   :  { %488 = vsyncadd [#allocation3], 4294967168 }
   0xa   :  { %489 = dma.done.wait [#allocation6], 1280  }
   0xb   :  { %490 = vsyncadd [#allocation6], 4294966016  ;;  %vm80_vm0 = vcmask 1041408   ;;  %v71_v0 = vld [vmem:[%s821_s1 + $0x38] sm:$0x3]  ;;  %v70_v1 = vld [vmem:[%s821_s1 + $0x30] sm:$0xff] }
   0xc   :  { %396 = vmatpush.msk.msra.mxu0 %vm80_vm0, %v71_v0  ;;  %vm123_vm1 = vcmask 1043456   ;;  %v69_v2 = vld [vmem:[%s821_s1 + $0x28] sm:$0xff]  ;;  %v114_v3 = vld [vmem:[#allocation5 + $0x48] sm:$0xf]  ;;  %v68_v5 = vld [vmem:[%s821_s1 + $0x20] sm:$0xff]  ;;  %vm76_vm2 = vcmask 474112  }
   0xd   :  { %v113_v4 = vld [vmem:[#allocation5 + $0x40] sm:$0xff]  ;;  %398 = vmatpush.msk.msra.mxu1 %vm123_vm1, %v114_v3  ;;  %v112_v6 = vld [vmem:[#allocation5 + $0x38] sm:$0xff]  ;;  %v67_v7 = vld [vmem:[%s821_s1 + $0x18] sm:$0xff]  ;;  %vm119_vm3 = vcmask 621568   ;;  %vm184_vm4 = vcmask 949248   ;;  %vm286_vm5 = vcmask 359424  }
   0xe   :  { %93 = vmatpush.msra.mxu0 %v70_v1  ;;  %v111_v8 = vld [vmem:[#allocation5 + $0x30] sm:$0xff]  ;;  %v66_v9 = vld [vmem:[%s821_s1 + $0x10] sm:$0xff]  ;;  %v65_v11 = vld [vmem:[%s821_s1 + $0x8] sm:$0xff]  ;;  %s385_s18 = sshll.u32 %s829_s9, 4  ;;  %s386_s18 = int_to_ptr.hbm [resolvable:$true] %s385_s18 }
   0xf   :  { %134 = vmatpush.msra.mxu1 %v113_v4  ;;  %v110_v10 = vld [vmem:[#allocation5 + $0x28] sm:$0xff]  ;;  %v109_v12 = vld [vmem:[#allocation5 + $0x20] sm:$0xff]  ;;  %v64_v13 = vld [vmem:[%s821_s1] sm:$0xff] }
  0x10   :  { %94 = vmatpush.msra.mxu0 %v69_v2  ;;  %v63_v14 = vld [vmem:[#allocation2] sm:$0xff]  ;;  %v107_v16 = vld [vmem:[#allocation5 + $0x10] sm:$0xff]  ;;  %v106_v17 = vld [vmem:[#allocation5 + $0x8] sm:$0xff] }
  0x11   :  { %135 = vmatpush.msra.mxu1 %v112_v6  ;;  %v108_v15 = vld [vmem:[#allocation5 + $0x18] sm:$0xff]  ;;  %v105_v18 = vld [vmem:[#allocation5] sm:$0xff]  ;;  %v174_v21 = vld [vmem:[%s825_s5 + $0xd0] sm:$0xff] }
  0x12   :  { %95 = vmatpush.msra.mxu0 %v68_v5  ;;  %v176_v19 = vld [vmem:[%s825_s5 + $0xe0] sm:$0xf]  ;;  %v177_v20 = vld [vmem:[%s825_s5 + $0xe8] sm:$0xf]  ;;  %v175_v22 = vld [vmem:[%s825_s5 + $0xd8] sm:$0xff] }
  0x13   :  { %136 = vmatpush.msra.mxu1 %v111_v8  ;;  %400 = vmatpush.msk.msra.mxu2 %vm123_vm1, %v176_v19  ;;  %v172_v23 = vld [vmem:[%s825_s5 + $0xc0] sm:$0xff]  ;;  %v173_v24 = vld [vmem:[%s825_s5 + $0xc8] sm:$0xff]  ;;  %v170_v25 = vld [vmem:[%s825_s5 + $0xb0] sm:$0xff] }
  0x14   :  { %96 = vmatpush.msra.mxu0 %v67_v7  ;;  %402 = vmatpush.msk.msra.mxu3 %vm123_vm1, %v177_v20  ;;  %v171_v26 = vld [vmem:[%s825_s5 + $0xb8] sm:$0xff]  ;;  %v168_v27 = vld [vmem:[%s825_s5 + $0xa0] sm:$0xff]  ;;  %v169_v28 = vld [vmem:[%s825_s5 + $0xa8] sm:$0xff] }
  0x15   :  { %137 = vmatpush.msra.mxu1 %v110_v10  ;;  %196 = vmatpush.msra.mxu2 %v174_v21  ;;  %v166_v29 = vld [vmem:[%s825_s5 + $0x90] sm:$0xff]  ;;  %v167_v30 = vld [vmem:[%s825_s5 + $0x98] sm:$0xff]  ;;  %v164_v31 = vld [vmem:[%s825_s5 + $0x80] sm:$0xff] }
  0x16   :  { %97 = vmatpush.msra.mxu0 %v66_v9  ;;  %216 = vmatpush.msra.mxu3 %v175_v22  ;;  %v165_v32 = vld [vmem:[%s825_s5 + $0x88] sm:$0xff]  ;;  %v162_v33 = vld [vmem:[%s825_s5 + $0x70] sm:$0xff]  ;;  %v163_v34 = vld [vmem:[%s825_s5 + $0x78] sm:$0xff] }
  0x17   :  { %138 = vmatpush.msra.mxu1 %v109_v12  ;;  %197 = vmatpush.msra.mxu2 %v172_v23  ;;  %v160_v35 = vld [vmem:[%s825_s5 + $0x60] sm:$0xff]  ;;  %v161_v36 = vld [vmem:[%s825_s5 + $0x68] sm:$0xff]  ;;  %v158_v37 = vld [vmem:[%s825_s5 + $0x50] sm:$0xff] }
  0x18   :  { %98 = vmatpush.msra.mxu0 %v65_v11  ;;  %217 = vmatpush.msra.mxu3 %v173_v24  ;;  %v159_v38 = vld [vmem:[%s825_s5 + $0x58] sm:$0xff]  ;;  %v156_v39 = vld [vmem:[%s825_s5 + $0x40] sm:$0xff]  ;;  %v157_v40 = vld [vmem:[%s825_s5 + $0x48] sm:$0xff] }
  0x19   :  { %139 = vmatpush.msra.mxu1 %v108_v15  ;;  %198 = vmatpush.msra.mxu2 %v170_v25  ;;  %v154_v41 = vld [vmem:[%s825_s5 + $0x30] sm:$0xff]  ;;  %v155_v42 = vld [vmem:[%s825_s5 + $0x38] sm:$0xff]  ;;  %v413_v43 = vld [vmem:[%s822_s2] ss:$0 sm:$0xff] }
  0x1a   :  { %99 = vmatpush.msra.mxu0 %v64_v13  ;;  %218 = vmatpush.msra.mxu3 %v171_v26  ;;  %v152_v47 = vld [vmem:[%s825_s5 + $0x20] sm:$0xff]  ;;  %v153_v48 = vld [vmem:[%s825_s5 + $0x28] sm:$0xff]  ;;  %v150_v49 = vld [vmem:[%s825_s5 + $0x10] sm:$0xff] }
  0x1b   :  { %397 = vmatmul.msk.f32.vlgmr.msra.gmra.mxu0 %vm76_vm2, %v63_v14  ;;  %140 = vmatpush.msra.mxu1 %v107_v16  ;;  %v151_v50 = vld [vmem:[%s825_s5 + $0x18] sm:$0xff]  ;;  %v148_v51 = vld [vmem:[%s825_s5] sm:$0xff]  ;;  %v149_v52 = vld [vmem:[%s825_s5 + $0x8] sm:$0xff] }
  0x1c   :  { %199 = vmatpush.msra.mxu2 %v168_v27  ;;  %219 = vmatpush.msra.mxu3 %v169_v28  ;;  %v266_v53 = vld [vmem:[%s827_s7 + $0xf0] sm:$0xff]  ;;  %v267_v54 = vld [vmem:[%s827_s7 + $0xf8] sm:$0xff]  ;;  %v264_v55 = vld [vmem:[%s827_s7 + $0xe0] sm:$0xff] }
  0x1d   :  { %141 = vmatpush.msra.mxu1 %v106_v17  ;;  %296 = vmatpush.msrb.mxu0 %v266_v53  ;;  %v265_v56 = vld [vmem:[%s827_s7 + $0xe8] sm:$0xff]  ;;  %v262_v57 = vld [vmem:[%s827_s7 + $0xd0] sm:$0xff]  ;;  %v263_v58 = vld [vmem:[%s827_s7 + $0xd8] sm:$0xff] }
  0x1e   :  { %200 = vmatpush.msra.mxu2 %v166_v29  ;;  %220 = vmatpush.msra.mxu3 %v167_v30  ;;  %v260_v59 = vld [vmem:[%s827_s7 + $0xc0] sm:$0xff]  ;;  %v261_v60 = vld [vmem:[%s827_s7 + $0xc8] sm:$0xff]  ;;  %v258_v61 = vld [vmem:[%s827_s7 + $0xb0] sm:$0xff] }
  0x1f   :  { %142 = vmatpush.msra.mxu1 %v105_v18  ;;  %297 = vmatpush.msrb.mxu0 %v264_v55  ;;  %v259_v62 = vld [vmem:[%s827_s7 + $0xb8] sm:$0xff]  ;;  %v278_v63 = vld [vmem:[%s827_s7 + $0x150] sm:$0xf]  ;;  %v256_v1 = vld [vmem:[%s827_s7 + $0xa0] sm:$0xff] }
  0x20   :  { %201 = vmatpush.msra.mxu2 %v164_v31  ;;  %221 = vmatpush.msra.mxu3 %v165_v32  ;;  %v279_v0 = vld [vmem:[%s827_s7 + $0x158] sm:$0xf]  ;;  %v257_v2 = vld [vmem:[%s827_s7 + $0xa8] sm:$0xff]  ;;  %v276_v3 = vld [vmem:[%s827_s7 + $0x140] sm:$0xff] }
  0x21   :  { %298 = vmatpush.msrb.mxu0 %v262_v57  ;;  %404 = vmatpush.msk.msrb.mxu1 %vm123_vm1, %v278_v63  ;;  %v277_v4 = vld [vmem:[%s827_s7 + $0x148] sm:$0xff]  ;;  %v274_v5 = vld [vmem:[%s827_s7 + $0x130] sm:$0xff]  ;;  %v255_v7 = vld [vmem:[%s827_s7 + $0x98] sm:$0xff] }
  0x22   :  { %202 = vmatpush.msra.mxu2 %v162_v33  ;;  %222 = vmatpush.msra.mxu3 %v163_v34  ;;  %v254_v6 = vld [vmem:[%s827_s7 + $0x90] sm:$0xff]  ;;  %v275_v8 = vld [vmem:[%s827_s7 + $0x138] sm:$0xff]  ;;  %v252_v9 = vld [vmem:[%s827_s7 + $0x80] sm:$0xff] }
  0x23   :  { %299 = vmatpush.msrb.mxu0 %v260_v59  ;;  %327 = vmatpush.msrb.mxu1 %v276_v3  ;;  %v253_v10 = vld [vmem:[%s827_s7 + $0x88] sm:$0xff]  ;;  %v250_v11 = vld [vmem:[%s827_s7 + $0x70] sm:$0xff]  ;;  %v251_v12 = vld [vmem:[%s827_s7 + $0x78] sm:$0xff] }
  0x24   :  { %203 = vmatpush.msra.mxu2 %v160_v35  ;;  %223 = vmatpush.msra.mxu3 %v161_v36  ;;  %v248_v13 = vld [vmem:[%s827_s7 + $0x60] sm:$0xff]  ;;  %v249_v14 = vld [vmem:[%s827_s7 + $0x68] sm:$0xff]  ;;  %v246_v15 = vld [vmem:[%s827_s7 + $0x50] sm:$0xff] }
  0x25   :  { %300 = vmatpush.msrb.mxu0 %v258_v61  ;;  %328 = vmatpush.msrb.mxu1 %v274_v5  ;;  %v247_v16 = vld [vmem:[%s827_s7 + $0x58] sm:$0xff]  ;;  %v244_v17 = vld [vmem:[%s827_s7 + $0x40] sm:$0xff]  ;;  %v245_v18 = vld [vmem:[%s827_s7 + $0x48] sm:$0xff] }
  0x26   :  { %204 = vmatpush.msra.mxu2 %v158_v37  ;;  %224 = vmatpush.msra.mxu3 %v159_v38  ;;  %v242_v19 = vld [vmem:[%s827_s7 + $0x30] sm:$0xff]  ;;  %v243_v20 = vld [vmem:[%s827_s7 + $0x38] sm:$0xff]  ;;  %v414_v21 = vld [vmem:[%s824_s4] ss:$0 sm:$0xff] }
  0x27   :  { %301 = vmatpush.msrb.mxu0 %v256_v1  ;;  %v240_v25 = vld [vmem:[%s827_s7 + $0x20] sm:$0xff]  ;;  %v241_v27 = vld [vmem:[%s827_s7 + $0x28] sm:$0xff]  ;;  %v238_v29 = vld [vmem:[%s827_s7 + $0x10] sm:$0xff] }
  0x28   :  { %205 = vmatpush.msra.mxu2 %v156_v39  ;;  %225 = vmatpush.msra.mxu3 %v157_v40  ;;  %v272_v26 = vld [vmem:[%s827_s7 + $0x120] sm:$0xff]  ;;  %v273_v28 = vld [vmem:[%s827_s7 + $0x128] sm:$0xff]  ;;  %v270_v30 = vld [vmem:[%s827_s7 + $0x110] sm:$0xff] }
  0x29   :  { %302 = vmatpush.msrb.mxu0 %v254_v6  ;;  %329 = vmatpush.msrb.mxu1 %v272_v26  ;;  %v239_v31 = vld [vmem:[%s827_s7 + $0x18] sm:$0xff]  ;;  %v236_v33 = vld [vmem:[%s827_s7] sm:$0xff]  ;;  %v237_v35 = vld [vmem:[%s827_s7 + $0x8] sm:$0xff] }
  0x2a   :  { %206 = vmatpush.msra.mxu2 %v154_v41  ;;  %226 = vmatpush.msra.mxu3 %v155_v42  ;;  %v271_v32 = vld [vmem:[%s827_s7 + $0x118] sm:$0xff]  ;;  %v268_v34 = vld [vmem:[%s827_s7 + $0x100] sm:$0xff]  ;;  %v269_v36 = vld [vmem:[%s827_s7 + $0x108] sm:$0xff] }
  0x2b   :  { %303 = vmatpush.msrb.mxu0 %v252_v9  ;;  %330 = vmatpush.msrb.mxu1 %v270_v30  ;;  %v178_v37 = vld [vmem:[%s826_s6] sm:$0x3]  ;;  %s497_s6 = smov [#allocation7]  }
  0x2c   :  { %207 = vmatpush.msra.mxu2 %v152_v47  ;;  %227 = vmatpush.msra.mxu3 %v153_v48  ;;  %v180_v38 = vperm.slane %v178_v37, 0  ;;  %v181_v39 = vperm.slane %v178_v37, 1  ;;  %s383_s1 = sshll.u32 %s497_s6, 4  ;;  %s384_s1 = int_to_ptr.vmem [resolvable:$true] %s383_s1 }
  0x2d   :  { %304 = vmatpush.msrb.mxu0 %v250_v11  ;;  %331 = vmatpush.msrb.mxu1 %v268_v34 }
  0x2e   :  { %208 = vmatpush.msra.mxu2 %v150_v49  ;;  %228 = vmatpush.msra.mxu3 %v151_v50 }
  0x2f   :  { %305 = vmatpush.msrb.mxu0 %v248_v13 }
  0x30   :  { %209 = vmatpush.msra.mxu2 %v148_v51  ;;  %229 = vmatpush.msra.mxu3 %v149_v52 }
  0x31   :  { %306 = vmatpush.msrb.mxu0 %v246_v15 }
  0x32   :  { %336 = vmatpush.msrb.mxu2 %v267_v54  ;;  %406 = vmatpush.msk.msrb.mxu3 %vm123_vm1, %v279_v0 }
  0x33   :  { %307 = vmatpush.msrb.mxu0 %v244_v17 }
  0x34   :  { %337 = vmatpush.msrb.mxu2 %v265_v56  ;;  %367 = vmatpush.msrb.mxu3 %v277_v4 }
  0x35   :  { %308 = vmatpush.msrb.mxu0 %v242_v19 }
  0x36   :  { %338 = vmatpush.msrb.mxu2 %v263_v58  ;;  %368 = vmatpush.msrb.mxu3 %v275_v8 }
  0x37   :  { %309 = vmatpush.msrb.mxu0 %v240_v25 }
  0x38   :  { %339 = vmatpush.msrb.mxu2 %v261_v60  ;;  %369 = vmatpush.msrb.mxu3 %v273_v28 }
  0x39   :  { %310 = vmatpush.msrb.mxu0 %v238_v29 }
  0x3a   :  { %340 = vmatpush.msrb.mxu2 %v259_v62  ;;  %370 = vmatpush.msrb.mxu3 %v271_v32 }
  0x3b   :  { %311 = vmatpush.msrb.mxu0 %v236_v33 }
  0x3c   :  { %341 = vmatpush.msrb.mxu2 %v257_v2  ;;  %371 = vmatpush.msrb.mxu3 %v269_v36 }
  0x3e   :  { %342 = vmatpush.msrb.mxu2 %v255_v7 }
  0x40   :  { %343 = vmatpush.msrb.mxu2 %v253_v10 }
  0x42   :  { %344 = vmatpush.msrb.mxu2 %v251_v12 }
  0x44   :  { %345 = vmatpush.msrb.mxu2 %v249_v14 }
  0x46   :  { %346 = vmatpush.msrb.mxu2 %v247_v16 }
  0x48   :  { %347 = vmatpush.msrb.mxu2 %v245_v18 }
  0x4a   :  { %348 = vmatpush.msrb.mxu2 %v243_v20 }
  0x4c   :  { %349 = vmatpush.msrb.mxu2 %v241_v27 }
  0x4e   :  { %350 = vmatpush.msrb.mxu2 %v239_v31 }
  0x50   :  { %351 = vmatpush.msrb.mxu2 %v237_v35 }
  0x98   :  { %v101_v44 = vpop.f32.mrf.mxu0 }
  0x99   :  { %v102_v45 = vadd.f32 %v413_v43, %v101_v44 }
  0x9b   :  { %v104_v46 = vmax.f32 %v102_v45, 0.0 }
  0x9d   :  { %399 = vmatmul.msk.f32.vlgmr.msra.gmra.mxu1 %vm119_vm3, %v104_v46  ;;  %v280_v46 = vld [vmem:[%s828_s8] sm:$0x3] }
  0x9e   :  { %v282_v47 = vperm.slane %v280_v46, 0  ;;  %v283_v52 = vperm.slane %v280_v46, 1 }
 0x11a   :  { %v144_v22 = vpop.f32.mrf.mxu1 }
 0x11b   :  { %v145_v23 = vadd.f32 %v414_v21, %v144_v22 }
 0x11d   :  { %v147_v24 = vmax.f32 %v145_v23, 0.0 }
 0x11f   :  { %401 = vmatmul.msk.f32.vlgmr.msra.gmra.mxu2 %vm184_vm4, %v147_v24  ;;  %403 = vmatmul.msk.f32.vlgmr.msra.gmra.mxu3 %vm184_vm4, %v147_v24 }
 0x1a2   :  { %v211_v40 = vpop.f32.mrf.mxu2  ;;  %v231_v41 = vpop.f32.mrf.mxu3 }
 0x1a3   :  { %v212_v42 = vadd.f32 %v211_v40, %v180_v38  ;;  %v232_v43 = vadd.f32 %v231_v41, %v181_v39 }
 0x1a5   :  { %v234_v44 = vmax.f32 %v212_v42, 0.0  ;;  %v235_v45 = vmax.f32 %v232_v43, 0.0 }
 0x1a7   :  { %312 = vmatmul.f32.vlgmr.msrb.gmra.mxu0 %v234_v44  ;;  %405 = vmatmul.msk.f32.vlgmr.msrb.gmra.mxu1 %vm286_vm5, %v235_v45 }
 0x1a8   :  { %352 = vmatmul.f32.vlgmr.msrb.gmra.mxu2 %v234_v44  ;;  %407 = vmatmul.msk.f32.vlgmr.msrb.gmra.mxu3 %vm286_vm5, %v235_v45 }
 0x224   :  { %v313_v48 = vpop.f32.mrf.mxu0  ;;  %v333_v50 = vpop.f32.mrf.mxu1 }
 0x225   :  { %v314_v49 = vadd.f32 %v313_v48, %v282_v47 }
 0x227   :  { %v334_v51 = vadd.f32 %v333_v50, %v314_v49 }
 0x229   :  { %376 = vst [vmem:[#allocation7] sm:$0xff] %v334_v51 }
 0x22b   :  { %v353_v53 = vpop.f32.mrf.mxu2  ;;  %v373_v55 = vpop.f32.mrf.mxu3 }
 0x22c   :  { %v354_v54 = vadd.f32 %v353_v53, %v283_v52 }
 0x22e   :  { %v374_v56 = vadd.f32 %v373_v55, %v354_v54 }
 0x230   :  { %377 = vst [vmem:[#allocation7 + $0x8] sm:$0xff] %v374_v56 }
 0x231   :  { %388 = dma.vmem_to_hbm [thread:$0]  %s384_s1, 256, %s386_s18, [#allocation4]  }
 0x232   :  { %491 = dma.done.wait [#allocation4], 256  }
 0x233   :  { %492 = vsyncadd [#allocation4], 4294967040 }
 0x234   :  { %393 = vsyncpa [#allocation3], 1 }
 0x235   :  { %394 = vsyncpa [#allocation6], 1 }
 0x236   :  { %395 = vsyncpa [#allocation4], 1 }

</bundles_post_ra>
